<compile_context>
chip_gen: v7x
topology: tpu7x:2x2x1
jax: 0.10.0
libtpu: 0.0.40
codegen_flags: <defaults>
</compile_context>

<pallas_src>
import functools

import jax
import jax.numpy as jnp
from jax import lax
from jax.experimental import pallas as pl
from jax.experimental.pallas import tpu as pltpu

IGNORE_INDEX = -100
_LANE = 128
_DEFAULT_TM = 512
_VMEM_LIMIT_BYTES = 32 * 1024 * 1024  # safe scoped-VMEM budget on v5e/v6e/v7x
_X_TILE_BUDGET_BYTES = 8 * 1024 * 1024  # double-buffered x-tile budget


def _round_up(x, m):
    return ((x + m - 1) // m) * m


def _pick_tm(m, h, itemsize):
    # Whole-array block when small (always a legal block shape); otherwise a
    # <=512-row tile (multiple of 8 sublanes), shrunk if H is very large so the
    # double-buffered activation tile stays within budget. The ragged last tile
    # is handled by Pallas write masking + in-kernel row masking.
    if m <= _DEFAULT_TM:
        return m
    tm = _DEFAULT_TM
    while tm > 64 and 2 * tm * h * itemsize > _X_TILE_BUDGET_BYTES:
        tm //= 2
    return tm


# --------------------------------------------------------------------------
# Kernel 1: classifier only   logits = x @ W + b   (labels is None path)
# --------------------------------------------------------------------------
def _classifier_kernel(x_ref, w_ref, b_ref, out_ref):
    acc = jnp.dot(x_ref[...], w_ref[...], preferred_element_type=jnp.float32)
    logits = acc + b_ref[...]                               # (TM, L_pad) f32
    # Store only the real L columns (out block last dim == L, no wrapper slice).
    out_ref[...] = logits[:, : out_ref.shape[-1]].astype(out_ref.dtype)


def classifier_forward(x2d, w_pad, b_pad, num_labels, tm):
    m, h = x2d.shape
    l_pad = w_pad.shape[1]
    grid = (pl.cdiv(m, tm),)
    return pl.pallas_call(
        _classifier_kernel,
        out_shape=jax.ShapeDtypeStruct((m, num_labels), jnp.float32),
        grid_spec=pltpu.PrefetchScalarGridSpec(
            num_scalar_prefetch=0,
            grid=grid,
            in_specs=[
                pl.BlockSpec((tm, h), lambda i: (i, 0)),     # x rows: tiled
                pl.BlockSpec((h, l_pad), lambda i: (0, 0)),  # W: resident
                pl.BlockSpec((1, l_pad), lambda i: (0, 0)),  # bias: resident
            ],
            out_specs=pl.BlockSpec((tm, num_labels), lambda i: (i, 0)),
        ),
        compiler_params=pltpu.CompilerParams(
            dimension_semantics=("parallel",),
            vmem_limit_bytes=_VMEM_LIMIT_BYTES),
    )(x2d, w_pad, b_pad)


# --------------------------------------------------------------------------
# Kernel 2: fused classifier + masked token-level cross-entropy
# --------------------------------------------------------------------------
def _classifier_ce_kernel(x_ref, w_ref, b_ref, lab_ref,
                          out_ref, psum_ref, pcnt_ref,
                          *, num_labels, num_rows, tm):
    i = pl.program_id(0)

    acc = jnp.dot(x_ref[...], w_ref[...], preferred_element_type=jnp.float32)
    logits = acc + b_ref[...]                                # (TM, L_pad) f32
    out_ref[...] = logits[:, :num_labels].astype(out_ref.dtype)

    # ---- CE epilogue (VPU/EUP slack under the MXU+DMA-bound matmul) ----
    labels = lab_ref[...]                                    # (TM, 1) int32, pre-masked
    tm_rows, l_pad = logits.shape
    col = lax.broadcasted_iota(jnp.int32, (tm_rows, l_pad), 1)

    # Mask padded label columns before max / logsumexp.
    logits_m = jnp.where(col < num_labels, logits, jnp.float32(-1e30))
    row_max = jnp.max(logits_m, axis=-1, keepdims=True)
    lse = row_max + jnp.log(
        jnp.sum(jnp.exp(logits_m - row_max), axis=-1, keepdims=True))

    # Target logit via one-hot compare (no gather on TPU).
    tgt = jnp.sum(jnp.where(col == labels, logits_m, 0.0),
                  axis=-1, keepdims=True)                    # (TM, 1)

    # Row validity: not ignore_index AND inside the real M (ragged last tile).
    row = i * tm + lax.broadcasted_iota(jnp.int32, (tm_rows, 1), 0)
    valid = (labels != IGNORE_INDEX) & (row < num_rows)
    per_tok = jnp.where(valid, lse - tgt, 0.0)

    tile_sum = jnp.sum(per_tok)
    tile_cnt = jnp.sum(valid.astype(jnp.float32))
    # Lane-dense (1, 8, 128) partial blocks -> unmasked stores, parallel-safe.
    psum_ref[...] = jnp.full(psum_ref.shape, tile_sum, dtype=jnp.float32)
    pcnt_ref[...] = jnp.full(pcnt_ref.shape, tile_cnt, dtype=jnp.float32)


def classifier_ce_forward(x2d, w_pad, b_pad, labels_2d, num_labels, tm):
    m, h = x2d.shape
    l_pad = w_pad.shape[1]
    grid_m = pl.cdiv(m, tm)
    kernel = functools.partial(_classifier_ce_kernel,
                               num_labels=num_labels, num_rows=m, tm=tm)
    logits, psum, pcnt = pl.pallas_call(
        kernel,
        out_shape=(
            jax.ShapeDtypeStruct((m, num_labels), jnp.float32),
            jax.ShapeDtypeStruct((grid_m, 8, _LANE), jnp.float32),
            jax.ShapeDtypeStruct((grid_m, 8, _LANE), jnp.float32),
        ),
        grid_spec=pltpu.PrefetchScalarGridSpec(
            num_scalar_prefetch=0,
            grid=(grid_m,),
            in_specs=[
                pl.BlockSpec((tm, h), lambda i: (i, 0)),
                pl.BlockSpec((h, l_pad), lambda i: (0, 0)),
                pl.BlockSpec((1, l_pad), lambda i: (0, 0)),
                pl.BlockSpec((tm, 1), lambda i: (i, 0)),
            ],
            out_specs=[
                pl.BlockSpec((tm, num_labels), lambda i: (i, 0)),
                pl.BlockSpec((1, 8, _LANE), lambda i: (i, 0, 0)),
                pl.BlockSpec((1, 8, _LANE), lambda i: (i, 0, 0)),
            ],
        ),
        compiler_params=pltpu.CompilerParams(
            dimension_semantics=("parallel",),
            vmem_limit_bytes=_VMEM_LIMIT_BYTES),
    )(x2d, w_pad, b_pad, labels_2d)

    loss_sum = jnp.sum(psum[:, 0, 0])
    cnt = jnp.sum(pcnt[:, 0, 0])
    # Note: no guard for cnt == 0 (all tokens masked) — matches torch reference.
    return logits, loss_sum / cnt


# --------------------------------------------------------------------------
# Head wrapper
# --------------------------------------------------------------------------
def token_classification_head(sequence_output, weight_hl, bias_l,
                              labels=None, attention_mask=None):
    """weight_hl is [H, L] (transposed vs nn.Linear's [L, H]); bias_l is [L]."""
    b, s, h = sequence_output.shape
    l = weight_hl.shape[1]
    l_pad = _round_up(l, _LANE)
    m = b * s

    # Keep activations/weights in their input dtype (bf16 feeds the MXU directly).
    x2d = sequence_output.reshape(m, h)
    tm = _pick_tm(m, h, x2d.dtype.itemsize)
    w_pad = (jnp.zeros((h, l_pad), weight_hl.dtype)
             .at[:, :l].set(weight_hl)).astype(x2d.dtype)
    b_pad = jnp.zeros((1, l_pad), jnp.float32).at[0, :l].set(
        bias_l.astype(jnp.float32))

    if labels is None:
        logits = classifier_forward(x2d, w_pad, b_pad, l, tm)
        return logits.reshape(b, s, l), None

    labels_flat = labels.reshape(m).astype(jnp.int32)
    if attention_mask is not None:
        mask_flat = attention_mask.reshape(m).astype(jnp.int32)
        labels_flat = jnp.where(mask_flat == 1, labels_flat,
                                jnp.int32(IGNORE_INDEX))
    labels_2d = labels_flat.reshape(m, 1)

    logits, loss = classifier_ce_forward(x2d, w_pad, b_pad, labels_2d, l, tm)
    return logits.reshape(b, s, l), loss


# --------------------------------------------------------------------------
# Pure-JAX reference for verification
# --------------------------------------------------------------------------
def _reference(sequence_output, weight_hl, bias_l, labels, attention_mask):
    l = weight_hl.shape[1]
    logits = sequence_output @ weight_hl + bias_l
    lab = labels.reshape(-1)
    if attention_mask is not None:
        lab = jnp.where(attention_mask.reshape(-1) == 1, lab, IGNORE_INDEX)
    lg = logits.reshape(-1, l).astype(jnp.float32)
    lse = jax.nn.logsumexp(lg, axis=-1)
    tgt = jnp.take_along_axis(lg, jnp.clip(lab, 0)[:, None], axis=-1)[:, 0]
    valid = lab != IGNORE_INDEX
    loss = jnp.sum(jnp.where(valid, lse - tgt, 0.0)) / jnp.sum(valid)
    return logits, loss


if __name__ == "__main__":
    def run_case(B, S, H, L, key, dtype, atol, rtol, use_mask=True):
        k_x, k_w, k_b, k_lab, k_mask = jax.random.split(key, 5)
        # deterministic parameter init per _init_weights()
        weight = (0.02 * jax.random.normal(k_w, (H, L))).astype(jnp.float32)
        bias = jax.random.uniform(k_b, (L,), minval=-1.43, maxval=1.43
                                  ).astype(jnp.float32)
        seq_out = jax.random.normal(k_x, (B, S, H), dtype=jnp.float32)
        labels = jax.random.randint(k_lab, (B, S), 0, L)
        attn = ((jax.random.uniform(k_mask, (B, S)) > 0.25).astype(jnp.int32)
                if use_mask else None)

        x_in = seq_out.astype(dtype)
        w_in = weight.astype(dtype)

        logits, loss = token_classification_head(
            x_in, w_in, bias, labels=labels, attention_mask=attn)
        logits = jax.block_until_ready(logits)
        loss = jax.block_until_ready(loss)

        ref_logits, ref_loss = _reference(
            x_in.astype(jnp.float32), w_in.astype(jnp.float32), bias,
            labels, attn)
        assert jnp.allclose(logits.astype(jnp.float32), ref_logits,
                            atol=atol, rtol=rtol), "logits mismatch"
        assert jnp.allclose(loss, ref_loss, atol=atol, rtol=rtol), "loss mismatch"

        # labels=None path (logits-only kernel)
        logits_nl, loss_nl = token_classification_head(x_in, w_in, bias)
        logits_nl = jax.block_until_ready(logits_nl)
        assert loss_nl is None
        assert jnp.allclose(logits_nl.astype(jnp.float32), ref_logits,
                            atol=atol, rtol=rtol), "no-label logits mismatch"

    key = jax.random.PRNGKey(0)
    k1, k2, k3, k4, k5 = jax.random.split(key, 5)

    # Small canonical shape (B=2, S=8, H=32, L=5), f32, with attention mask.
    run_case(2, 8, 32, 5, k1, dtype=jnp.float32, atol=1e-5, rtol=1e-5)
    # Multi-tile grid with a ragged last row tile (M = 1040 > TM = 512).
    run_case(2, 520, 64, 5, k2, dtype=jnp.float32, atol=1e-4, rtol=1e-4)
    # bf16 activations/weights fed straight to the MXU (f32 accumulation).
    run_case(2, 8, 32, 5, k3, dtype=jnp.bfloat16, atol=2e-3, rtol=2e-3)
    # L already lane-aligned (L == L_pad == 128).
    run_case(2, 8, 32, 128, k4, dtype=jnp.float32, atol=1e-5, rtol=1e-5)
    # No attention mask (plain CE over all tokens).
    run_case(2, 8, 32, 5, k5, dtype=jnp.float32, atol=1e-5, rtol=1e-5,
             use_mask=False)

    print("KERNEL_OK")
</pallas_src>

<mosaic_0001>
module attributes {stable_mosaic.version = 11 : i64} {
  func.func @_classifier_ce_kernel(%arg0: i32, %arg1: memref<16x32xf32, #tpu.memory_space<vmem>>, %arg2: memref<32x128xf32, #tpu.memory_space<vmem>>, %arg3: memref<1x128xf32, #tpu.memory_space<vmem>>, %arg4: memref<16x1xi32, #tpu.memory_space<vmem>>, %arg5: memref<16x5xf32, #tpu.memory_space<vmem>>, %arg6: memref<1x8x128xf32, #tpu.memory_space<vmem>>, %arg7: memref<1x8x128xf32, #tpu.memory_space<vmem>>) attributes {dimension_semantics = [#tpu.dimension_semantics<parallel>], iteration_bounds = array<i64: 1>, scalar_prefetch = 0 : i64, scratch_operands = 0 : i64, tpu.core_type = #tpu.core_type<tc>, window_params = [{transform_indices = @transform_0, window_bounds = array<i64: 16, 32>}, {pipeline_mode = #tpu.pipeline_mode<synchronous>, transform_indices = @transform_1, window_bounds = array<i64: 32, 128>}, {pipeline_mode = #tpu.pipeline_mode<synchronous>, transform_indices = @transform_2, window_bounds = array<i64: 1, 128>}, {transform_indices = @transform_3, window_bounds = array<i64: 16, 1>}, {transform_indices = @transform_4, window_bounds = array<i64: 16, 5>}, {transform_indices = @transform_5, window_bounds = array<i64: 1, 8, 128>}, {transform_indices = @transform_6, window_bounds = array<i64: 1, 8, 128>}]} {
    %c0 = arith.constant 0 : index
    %c0_0 = arith.constant 0 : index
    %0 = vector.load %arg1[%c0, %c0_0] : memref<16x32xf32, #tpu.memory_space<vmem>>, vector<16x32xf32>
    %c0_1 = arith.constant 0 : index
    %c0_2 = arith.constant 0 : index
    %1 = vector.load %arg2[%c0_1, %c0_2] : memref<32x128xf32, #tpu.memory_space<vmem>>, vector<32x128xf32>
    %cst = arith.constant dense<0.000000e+00> : vector<16x128xf32>
    %2 = tpu.matmul %0, %1, %cst {dimension_numbers = #tpu.dot_dimension_numbers<[1], [0], [0], [1], [0, 0, 1, 1], [], []>} : vector<16x32xf32>, vector<32x128xf32>, vector<16x128xf32> -> vector<16x128xf32>
    %c0_3 = arith.constant 0 : index
    %c0_4 = arith.constant 0 : index
    %3 = vector.load %arg3[%c0_3, %c0_4] : memref<1x128xf32, #tpu.memory_space<vmem>>, vector<1x128xf32>
    %4 = vector.broadcast %3 : vector<1x128xf32> to vector<16x128xf32>
    %5 = arith.addf %2, %4 : vector<16x128xf32>
    %6 = vector.extract_strided_slice %5 {offsets = [0, 0], sizes = [16, 5], strides = [1, 1]} : vector<16x128xf32> to vector<16x5xf32>
    %c0_5 = arith.constant 0 : index
    %c0_6 = arith.constant 0 : index
    %7 = vector.load %arg5[%c0_5, %c0_6] : memref<16x5xf32, #tpu.memory_space<vmem>>, vector<16x5xf32>
    tpu.vector_store %arg5[%c0_5, %c0_6], %6 {strides = array<i32>} : memref<16x5xf32, #tpu.memory_space<vmem>>, vector<16x5xf32>,
    %c0_7 = arith.constant 0 : index
    %c0_8 = arith.constant 0 : index
    %8 = vector.load %arg4[%c0_7, %c0_8] : memref<16x1xi32, #tpu.memory_space<vmem>>, vector<16x1xi32>
    %9 = tpu.iota {dimensions = array<i32: 1>} : vector<16x128xi32>
    %c5_i32 = arith.constant 5 : i32
    %10 = vector.broadcast %c5_i32 : i32 to vector<16x128xi32>
    %11 = arith.cmpi slt, %9, %10 : vector<16x128xi32>
    %cst_9 = arith.constant -1.000000e+30 : f32
    %12 = vector.broadcast %cst_9 : f32 to vector<16x128xf32>
    %13 = arith.select %11, %5, %12 : vector<16x128xi1>, vector<16x128xf32>
    %cst_10 = arith.constant dense<0xFF800000> : vector<16xf32>
    %14 = vector.multi_reduction <maximumf>, %13, %cst_10 [1] : vector<16x128xf32> to vector<16xf32>
    %15 = vector.shape_cast %14 : vector<16xf32> to vector<16x1xf32>
    %16 = vector.broadcast %15 : vector<16x1xf32> to vector<16x128xf32>
    %17 = arith.subf %13, %16 : vector<16x128xf32>
    %18 = math.exp %17 : vector<16x128xf32>
    %cst_11 = arith.constant dense<0.000000e+00> : vector<16xf32>
    %19 = vector.multi_reduction <add>, %18, %cst_11 [1] : vector<16x128xf32> to vector<16xf32>
    %20 = vector.shape_cast %19 : vector<16xf32> to vector<16x1xf32>
    %21 = math.log %20 : vector<16x1xf32>
    %22 = arith.addf %15, %21 : vector<16x1xf32>
    %23 = vector.broadcast %8 : vector<16x1xi32> to vector<16x128xi32>
    %24 = arith.cmpi eq, %9, %23 : vector<16x128xi32>
    %cst_12 = arith.constant 0.000000e+00 : f32
    %25 = vector.broadcast %cst_12 : f32 to vector<16x128xf32>
    %26 = arith.select %24, %13, %25 : vector<16x128xi1>, vector<16x128xf32>
    %cst_13 = arith.constant dense<0.000000e+00> : vector<16xf32>
    %27 = vector.multi_reduction <add>, %26, %cst_13 [1] : vector<16x128xf32> to vector<16xf32>
    %28 = vector.shape_cast %27 : vector<16xf32> to vector<16x1xf32>
    %c16_i32 = arith.constant 16 : i32
    %29 = arith.muli %arg0, %c16_i32 : i32
    %30 = tpu.iota {dimensions = array<i32: 0>} : vector<16x1xi32>
    %31 = vector.broadcast %29 : i32 to vector<16x1xi32>
    %32 = arith.addi %31, %30 : vector<16x1xi32>
    %c-100_i32 = arith.constant -100 : i32
    %33 = vector.broadcast %c-100_i32 : i32 to vector<16x1xi32>
    %34 = arith.cmpi ne, %8, %33 : vector<16x1xi32>
    %c16_i32_14 = arith.constant 16 : i32
    %35 = vector.broadcast %c16_i32_14 : i32 to vector<16x1xi32>
    %36 = arith.cmpi slt, %32, %35 : vector<16x1xi32>
    %37 = arith.andi %34, %36 : vector<16x1xi1>
    %38 = arith.subf %22, %28 : vector<16x1xf32>
    %cst_15 = arith.constant 0.000000e+00 : f32
    %39 = vector.broadcast %cst_15 : f32 to vector<16x1xf32>
    %40 = arith.select %37, %38, %39 : vector<16x1xi1>, vector<16x1xf32>
    %41 = vector.shape_cast %40 : vector<16x1xf32> to vector<1x16x1xf32>
    %cst_16 = arith.constant dense<0.000000e+00> : vector<1xf32>
    %42 = vector.multi_reduction <add>, %41, %cst_16 [1, 2] : vector<1x16x1xf32> to vector<1xf32>
    %43 = vector.shape_cast %42 : vector<1xf32> to vector<1x1x1xf32>
    %44 = vector.extract %43[0, 0, 0] : f32 from vector<1x1x1xf32>
    %45 = arith.extui %37 : vector<16x1xi1> to vector<16x1xi32>
    %46 = arith.sitofp %45 : vector<16x1xi32> to vector<16x1xf32>
    %47 = vector.shape_cast %46 : vector<16x1xf32> to vector<1x16x1xf32>
    %cst_17 = arith.constant dense<0.000000e+00> : vector<1xf32>
    %48 = vector.multi_reduction <add>, %47, %cst_17 [1, 2] : vector<1x16x1xf32> to vector<1xf32>
    %49 = vector.shape_cast %48 : vector<1xf32> to vector<1x1x1xf32>
    %50 = vector.extract %49[0, 0, 0] : f32 from vector<1x1x1xf32>
    %51 = vector.broadcast %44 : f32 to vector<1x8x128xf32>
    %c0_18 = arith.constant 0 : index
    %c0_19 = arith.constant 0 : index
    %c0_20 = arith.constant 0 : index
    %52 = vector.load %arg6[%c0_18, %c0_19, %c0_20] : memref<1x8x128xf32, #tpu.memory_space<vmem>>, vector<1x8x128xf32>
    tpu.vector_store %arg6[%c0_18, %c0_19, %c0_20], %51 {strides = array<i32>} : memref<1x8x128xf32, #tpu.memory_space<vmem>>, vector<1x8x128xf32>,
    %53 = vector.broadcast %50 : f32 to vector<1x8x128xf32>
    %c0_21 = arith.constant 0 : index
    %c0_22 = arith.constant 0 : index
    %c0_23 = arith.constant 0 : index
    %54 = vector.load %arg7[%c0_21, %c0_22, %c0_23] : memref<1x8x128xf32, #tpu.memory_space<vmem>>, vector<1x8x128xf32>
    tpu.vector_store %arg7[%c0_21, %c0_22, %c0_23], %53 {strides = array<i32>} : memref<1x8x128xf32, #tpu.memory_space<vmem>>, vector<1x8x128xf32>,
    return
  }
  func.func @transform_0(%arg0: i32) -> (i32, i32) {
    %c0_i32 = arith.constant 0 : i32
    %c0_i32_0 = arith.constant 0 : i32
    return %arg0, %c0_i32 : i32, i32
  }
  func.func @transform_1(%arg0: i32) -> (i32, i32) {
    %c0_i32 = arith.constant 0 : i32
    %c0_i32_0 = arith.constant 0 : i32
    %c0_i32_1 = arith.constant 0 : i32
    return %c0_i32, %c0_i32_0 : i32, i32
  }
  func.func @transform_2(%arg0: i32) -> (i32, i32) {
    %c0_i32 = arith.constant 0 : i32
    %c0_i32_0 = arith.constant 0 : i32
    %c0_i32_1 = arith.constant 0 : i32
    return %c0_i32, %c0_i32_0 : i32, i32
  }
  func.func @transform_3(%arg0: i32) -> (i32, i32) {
    %c0_i32 = arith.constant 0 : i32
    %c0_i32_0 = arith.constant 0 : i32
    return %arg0, %c0_i32 : i32, i32
  }
  func.func @transform_4(%arg0: i32) -> (i32, i32) {
    %c0_i32 = arith.constant 0 : i32
    %c0_i32_0 = arith.constant 0 : i32
    return %arg0, %c0_i32 : i32, i32
  }
  func.func @transform_5(%arg0: i32) -> (i32, i32, i32) {
    %c0_i32 = arith.constant 0 : i32
    %c0_i32_0 = arith.constant 0 : i32
    %c0_i32_1 = arith.constant 0 : i32
    return %arg0, %c0_i32, %c0_i32_0 : i32, i32, i32
  }
  func.func @transform_6(%arg0: i32) -> (i32, i32, i32) {
    %c0_i32 = arith.constant 0 : i32
    %c0_i32_0 = arith.constant 0 : i32
    %c0_i32_1 = arith.constant 0 : i32
    return %arg0, %c0_i32, %c0_i32_0 : i32, i32, i32
  }
}

</mosaic_0001>

<bundles_post_ra>
// kernel: tpu_custom_call.1
= control target key start
LH: loop header
LB: loop body
LE: loop exit
PB: predicated region body
PF: predicated region fallthrough
CT: control target
= control target key end

     0   :  { %12 = vsyncpa [#allocation3], 0  ;;  %s502_s0 = inlined_call_operand.vmem [shape: f32[16,32], index: 0, kind: input, shape index: {}]   ;;  %s503_s1 = inlined_call_operand.hbm [shape: f32[32,128], index: 1, kind: input, shape index: {}]   ;;  %s504_s2 = inlined_call_operand.vmem [shape: f32[1,128], index: 2, kind: input, shape index: {}]   ;;  %s505_s3 = inlined_call_operand.vmem [shape: s32[16,1], index: 3, kind: input, shape index: {}]   ;;  %s506_s4 = inlined_call_operand.vmem [shape: f32[16,5], index: 4, kind: output, shape index: {0}]   ;;  %s507_s5 = inlined_call_operand.hbm [shape: f32[1,8,128], index: 5, kind: output, shape index: {1}]   ;;  %s508_s6 = inlined_call_operand.hbm [shape: f32[1,8,128], index: 6, kind: output, shape index: {2}]  }
   0x1   :  { %13 = vsyncpa [#allocation4], 0 }
   0x2   :  { %14 = vsyncpa [#allocation7], 0  ;;  %s381_s21 = smov [#allocation2]   ;;  %s309_s25 = scalar_lea.hbm %s503_s1, 512 }
   0x3   :  { %s22_s22 = sshll.u32 %s381_s21, 4  ;;  %p310_p0 = scmp.ne.s32.totalorder %s503_s1, %s309_s25  ;;  %s23_s22 = int_to_ptr.vmem [resolvable:$true] %s22_s22 }
   0x4   :  { %p313_p1 = scmp.lt.u32.totalorder %s309_s25, %s503_s1 }
   0x6   :  { %p315_p2 = pnand %p313_p1, %p310_p0 }
   0x8   :  { %318 = shalt.err (!%p315_p2)
}
   0x9   :  { %s319_s30 = scalar_lea.vmem %s23_s22, 512  ;;  %p324_p4 = scmp.lt.s32.totalorder %s23_s22, %s23_s22 }
   0xa   :  { %p320_p3 = scmp.ne.s32.totalorder %s23_s22, %s319_s30  ;;  %p325_p5 = scmp.lt.s32.totalorder %s319_s30, %s319_s30 }
   0xc   :  { %p326_p6 = por %p325_p5, %p324_p4 }
   0xe   :  { %p327_p7 = pnand %p326_p6, %p320_p3 }
  0x10   :  { %330 = shalt.err (!%p327_p7)
}
  0x11   :  { %s382_s7 = smov 128   ;;  %s383_s8 = smov 8  }
  0x12   :  { %28 = dma.hbm_to_vmem [thread:$0]  %s503_s1, 512, %s23_s22, [#allocation3], %s382_s7, %s382_s7, %s383_s8  }
  0x13   :  { %375 = dma.done.wait [#allocation3], 512  }
  0x14   :  { %376 = vsyncadd [#allocation3], 4294966784  ;;  %v384_v0 = vmov 0   ;;  %vm49_vm0 = vcmask 261120   ;;  %v38_v1 = vld [vmem:[#allocation2] sm:$0xff]  ;;  %v39_v2 = vld [vmem:[#allocation2 + $0x8] sm:$0xff]  ;;  %v136_v11 = vlaneseq }
  0x15   :  { %299 = vset.pattern.permute.xlu1 %v384_v0  ;;  %300 = vset.pattern.permute.xlu0 %v384_v0  ;;  %v40_v3 = vld [vmem:[#allocation2 + $0x10] sm:$0xff]  ;;  %v280_v4 = vpack.c.bf16 %v39_v2, %v38_v1  ;;  %v41_v5 = vld [vmem:[#allocation2 + $0x18] sm:$0xff]  ;;  %v36_v6 = vld [vmem:[%s502_s0] sm:$0xff]  ;;  %vm131_vm1 = vcmask 39936   ;;  %v385_v32 = vmov 0.0   ;;  %vm192_vm7 = vcmask 7168  }
  0x16   :  { %v284_v7 = vpack.c.bf16 %v41_v5, %v40_v3  ;;  %277 = vmatprep.mubr.msk.f32.mxu0 %vm49_vm0, %v36_v6  ;;  %v442_v8 = vld [vmem:[%s505_s3] sm:$0xff]  ;;  %v448_v9 = vld [vmem:[%s505_s3 + $0x8] sm:$0xff]  ;;  %v137_v12 = vand.u32 127, %v136_v11  ;;  %s387_s23 = smov [#allocation6]  }
  0x17   :  { %281 = vmatprep.subr.bf16.mxu0 %v280_v4  ;;  %162 = vperm.xlu1 %299, %v442_v8   ;;  %v37_v10 = vld [vmem:[%s502_s0 + $0x8] sm:$0xff]  ;;  %v258_v13 = vld [vmem:[%s504_s2] ss:$0 sm:$0xff]  ;;  %vm182_vm5 = vcmp.ne.s32.totalorder %v442_v8, 4294967196  ;;  %vm183_vm6 = vcmp.ne.s32.totalorder %v448_v9, 4294967196  ;;  %s386_s2 = smov [#allocation5]  }
  0x18   :  { %283 = vmatpush3.bf16.msra.mxu0 %v280_v4  ;;  %vm138_vm2 = vcmp.lt.s32.totalorder %v137_v12, 5  ;;  %v261_v33 = vsel %vm182_vm5, 1.0, %v385_v32  ;;  %v262_v34 = vsel %vm183_vm6, 1.0, %v385_v32  ;;  %s243_s24 = sshll.u32 %s387_s23, 4  ;;  %s244_s24 = int_to_ptr.vmem [resolvable:$true] %s243_s24 }
  0x19   :  { %285 = vmatprep.subr.bf16.mxu0 %v284_v7  ;;  %v209_v35 = vsel %vm192_vm7, %v261_v33, 0.0  ;;  %v210_v36 = vsel %vm192_vm7, %v262_v34, 0.0 }
  0x1a   :  { %v211_v37 = vadd.f32 %v210_v36, %v209_v35 }
  0x1b   :  { %165 = vperm.xlu1 %299, %v448_v9  }
  0x1c   :  { %287 = vmatpush3.bf16.msra.mxu0 %v284_v7 }
  0x1f   :  { %278 = vmatmul.mubr.msk.f32.vlgmr.msra.gmra.mrb[0].mxu0 %vm49_vm0, %v37_v10 }
  0x96   :  { %v163_v26 = vpop.permute.xlu1 %162 }
  0x97   :  { %vm167_vm3 = vcmp.eq.s32.totalorder %v137_v12, %v163_v26 }
  0x9a   :  { %v166_v28 = vpop.permute.xlu1 %165 }
  0x9b   :  { %vm168_vm4 = vcmp.eq.s32.totalorder %v137_v12, %v166_v28 }
  0xf2   :  { %v279_v14 = vpop.f32.mrb[0].mxu0 }
  0xf3   :  { %v128_v15 = vadd.f32 %v279_v14, %v258_v13  ;;  %v122_v16 = vpop.f32.mrb[1].mxu0 }
  0xf4   :  { %v123_v17 = vadd.f32 %v258_v13, %v122_v16 }
  0xf5   :  { %133 = vst.msk [vmem:[%s506_s4 + $0x8] sm:$0xff] %vm131_vm1, %v128_v15  ;;  %v140_v19 = vsel %vm138_vm2, %v128_v15, -1e+30 }
  0xf6   :  { %132 = vst.msk [vmem:[%s506_s4] sm:$0xff] %vm131_vm1, %v123_v17  ;;  %v139_v18 = vsel %vm138_vm2, %v123_v17, -1e+30  ;;  %v170_v31 = vsel %vm168_vm4, %v140_v19, 0.0  ;;  %s233_s4 = sshll.u32 %s386_s2, 4  ;;  %s234_s4 = int_to_ptr.vmem [resolvable:$true] %s233_s4 }
  0xf7   :  { %141 = vmax.xlane.f32.xlu0 %v139_v18  ;;  %v169_v30 = vsel %vm167_vm3, %v139_v18, 0.0  ;;  %s331_s25 = scalar_lea.vmem %s234_s4, 128  ;;  %p336_p9 = scmp.lt.s32.totalorder %s234_s4, %s234_s4 }
  0xf8   :  { %p332_p8 = scmp.ne.s32.totalorder %s234_s4, %s331_s25  ;;  %p337_p10 = scmp.lt.s32.totalorder %s331_s25, %s331_s25 }
  0xfa   :  { %p338_p11 = por %p337_p10, %p336_p9 }
  0xfb   :  { %143 = vmax.xlane.f32.xlu0 %v140_v19 }
  0xfc   :  { %p339_p12 = pnand %p338_p11, %p332_p8 }
 0x184   :  { %v142_v20 = vpop.xlane.xlu0 %141 }
 0x185   :  { %v145_v21 = vsub.f32 %v139_v18, %v142_v20 }
 0x187   :  { %v147_v22 = vmul.f32 1.442695, %v145_v21 }
 0x188   :  { %v144_v23 = vpop.xlane.xlu0 %143 }
 0x189   :  { %301 = vpow2.f32 %v147_v22  ;;  %v146_v24 = vsub.f32 %v140_v19, %v144_v23 }
 0x18b   :  { %v149_v25 = vmul.f32 1.442695, %v146_v24 }
 0x18d   :  { %303 = vpow2.f32 %v149_v25 }
 0x193   :  { %v302_v27 = vpop.eup %301 }
 0x194   :  { %151 = vadd.xlane.f32.xlu0 %v302_v27 }
 0x197   :  { %v304_v29 = vpop.eup %303 }
 0x198   :  { %153 = vadd.xlane.f32.xlu1 %v304_v29  ;;  %171 = vadd.xlane.f32.xlu0 %v169_v30 }
 0x19c   :  { %173 = vadd.xlane.f32.xlu0 %v170_v31 }
 0x221   :  { %v152_v38 = vpop.xlane.xlu0 %151 }
 0x222   :  { %305 = vlog2.f32 %v152_v38 }
 0x225   :  { %v154_v39 = vpop.xlane.xlu1 %153  ;;  %v172_v42 = vpop.xlane.xlu0 %171 }
 0x226   :  { %307 = vlog2.f32 %v154_v39 }
 0x229   :  { %v174_v48 = vpop.xlane.xlu0 %173 }
 0x22c   :  { %v306_v40 = vpop.eup %305 }
 0x22d   :  { %v156_v41 = vmul.f32 0.6931472, %v306_v40 }
 0x22f   :  { %v159_v43 = vadd.f32 %v156_v41, %v142_v20 }
 0x230   :  { %v308_v44 = vpop.eup %307 }
 0x231   :  { %v158_v45 = vmul.f32 0.6931472, %v308_v44  ;;  %v188_v46 = vsub.f32 %v159_v43, %v172_v42 }
 0x233   :  { %v160_v47 = vadd.f32 %v158_v45, %v144_v23  ;;  %v190_v49 = vsel %vm182_vm5, %v188_v46, 0.0 }
 0x234   :  { %v193_v52 = vsel %vm192_vm7, %v190_v49, 0.0 }
 0x235   :  { %v189_v50 = vsub.f32 %v160_v47, %v174_v48 }
 0x237   :  { %v191_v51 = vsel %vm183_vm6, %v189_v50, 0.0 }
 0x238   :  { %v194_v53 = vsel %vm192_vm7, %v191_v51, 0.0 }
 0x239   :  { %v195_v54 = vadd.f32 %v194_v53, %v193_v52 }
 0x23b   :  { %196 = vadd.xlane.f32.xlu0 %v195_v54 }
 0x23f   :  { %212 = vadd.xlane.f32.xlu0 %v211_v37 }
 0x2c8   :  { %v197_v55 = vpop.xlane.xlu0 %196 }
 0x2c9   :  { %v198_v56 = vrot.slane %v197_v55, 4 }
 0x2cb   :  { %v199_v57 = vadd.f32 %v198_v56, %v197_v55 }
 0x2cc   :  { %v213_v58 = vpop.xlane.xlu0 %212 }
 0x2cd   :  { %v200_v59 = vrot.slane %v199_v57, 2  ;;  %v214_v60 = vrot.slane %v213_v58, 4 }
 0x2cf   :  { %v215_v61 = vadd.f32 %v214_v60, %v213_v58  ;;  %v201_v62 = vadd.f32 %v200_v59, %v199_v57 }
 0x2d1   :  { %v216_v63 = vrot.slane %v215_v61, 2  ;;  %v202_v0 = vrot.slane %v201_v62, 1 }
 0x2d3   :  { %v217_v1 = vadd.f32 %v216_v63, %v215_v61  ;;  %v203_v2 = vadd.f32 %v202_v0, %v201_v62 }
 0x2d5   :  { %288 = vpush %v203_v2  ;;  %v218_v3 = vrot.slane %v217_v1, 1 }
 0x2d7   :  { %v219_v4 = vadd.f32 %v218_v3, %v217_v1 }
 0x2d9   :  { %290 = vpush %v219_v4 }
 0x306   :  { %s289_s22 = spop %288 }
 0x307   :  { %v221_v5 = vstv %s289_s22 }
 0x308   :  { %222 = vst [vmem:[#allocation5] sm:$0xff] %v221_v5 }
 0x309   :  { %342 = shalt.err (!%p339_p12)
}
 0x30a   :  { %s343_s28 = scalar_lea.hbm %s507_s5, 128 }
 0x30b   :  { %p344_p13 = scmp.ne.s32.totalorder %s507_s5, %s343_s28  ;;  %p347_p0 = scmp.lt.u32.totalorder %s343_s28, %s507_s5 }
 0x30d   :  { %p349_p1 = pnand %p347_p0, %p344_p13 }
 0x30f   :  { %352 = shalt.err (!%p349_p1)
}
 0x310   :  { %236 = dma.vmem_to_hbm [thread:$0]  %s234_s4, 128, %s507_s5, [#allocation4]  }
 0x311   :  { %s291_s11 = spop %290  ;;  %s353_s12 = scalar_lea.vmem %s244_s24, 128 }
 0x312   :  { %v223_v6 = vstv %s291_s11  ;;  %p354_p2 = scmp.ne.s32.totalorder %s244_s24, %s353_s12  ;;  %p358_p3 = scmp.lt.s32.totalorder %s244_s24, %s244_s24 }
 0x313   :  { %224 = vst [vmem:[#allocation6] sm:$0xff] %v223_v6  ;;  %p359_p4 = scmp.lt.s32.totalorder %s353_s12, %s353_s12 }
 0x315   :  { %p360_p5 = por %p359_p4, %p358_p3 }
 0x317   :  { %p361_p6 = pnand %p360_p5, %p354_p2 }
 0x319   :  { %364 = shalt.err (!%p361_p6)
}
 0x31a   :  { %s365_s14 = scalar_lea.hbm %s508_s6, 128 }
 0x31b   :  { %p366_p7 = scmp.ne.s32.totalorder %s508_s6, %s365_s14  ;;  %p369_p8 = scmp.lt.u32.totalorder %s365_s14, %s508_s6 }
 0x31d   :  { %p371_p9 = pnand %p369_p8, %p366_p7 }
 0x31f   :  { %374 = shalt.err (!%p371_p9)
}
 0x320   :  { %246 = dma.vmem_to_hbm [thread:$0]  %s244_s24, 128, %s508_s6, [#allocation7]  }
 0x321   :  { %377 = dma.done.wait [#allocation4], 128  }
 0x322   :  { %378 = vsyncadd [#allocation4], 4294967168 }
 0x323   :  { %379 = dma.done.wait [#allocation7], 128  }
 0x324   :  { %380 = vsyncadd [#allocation7], 4294967168 }
 0x325   :  { %255 = vsyncpa [#allocation3], 1 }
 0x326   :  { %256 = vsyncpa [#allocation4], 1 }
 0x327   :  { %257 = vsyncpa [#allocation7], 1 }

</bundles_post_ra>
